<compile_context>
chip_gen: v7x
topology: tpu7x:2x2x1
jax: 0.10.0
libtpu: 0.0.40
codegen_flags: <defaults>
</compile_context>

<pallas_src>
import numpy as np
import jax
import jax.numpy as jnp
from jax.experimental import pallas as pl
from jax.experimental.pallas import tpu as pltpu

LANE = 128
TARGET_BLOCK_BYTES = 2 * 1024 * 1024   # ~2 MiB per input block


def _sublane_for(dtype) -> int:
    # Second-to-last-dim alignment required by the packed vreg layout.
    itemsize = np.dtype(dtype).itemsize
    return max(8, 32 // itemsize)       # f32 -> 8, bf16 -> 16, int8/fp8 -> 32


# ---------------------------------------------------------------------------
# Pallas kernel: out = x * g  (g is a scalar parameter living in SMEM)
# ---------------------------------------------------------------------------
def _rezero_kernel(g_ref, x_ref, o_ref):
    # g_ref: (1,) float32 in SMEM; x_ref / o_ref: (tile_rows, 128) in VMEM.
    o_ref[...] = (x_ref[...].astype(jnp.float32) * g_ref[0]).astype(o_ref.dtype)


def _rezero_scale_2d(y2, g_arr):
    """Scale a lane-dense (R, 128) slab; R is a multiple of the dtype sublane."""
    R, D = y2.shape
    itemsize = np.dtype(y2.dtype).itemsize
    sublane = _sublane_for(y2.dtype)

    # Block rows from a byte budget (lane width fixed at 128).
    tb = TARGET_BLOCK_BYTES // (D * itemsize)
    tb = max(sublane, min((tb // sublane) * sublane, R))
    # Guarantee >= 2 grid steps when possible so the "parallel" grid axis can
    # be sharded across the two TensorCores on v7x.
    if tb >= R and R >= 2 * sublane:
        tb = ((R + 2 * sublane - 1) // (2 * sublane)) * sublane
    grid = (pl.cdiv(R, tb),)

    return pl.pallas_call(
        _rezero_kernel,
        out_shape=jax.ShapeDtypeStruct((R, D), y2.dtype),
        grid=grid,
        in_specs=[
            pl.BlockSpec(memory_space=pltpu.MemorySpace.SMEM),   # scalar g
            pl.BlockSpec((tb, D), lambda i: (i, 0)),             # x tile
        ],
        out_specs=pl.BlockSpec((tb, D), lambda i: (i, 0)),
        compiler_params=pltpu.CompilerParams(
            dimension_semantics=("parallel",)),
        cost_estimate=pl.CostEstimate(
            flops=R * D, transcendentals=0,
            bytes_accessed=2 * R * D * itemsize),
    )(g_arr, y2)


def rezero_scale(y, g):
    """Returns y * g for a scalar learnable parameter g (the Rezero rescale)."""
    y = jnp.asarray(y)
    g_arr = jnp.reshape(jnp.asarray(g, dtype=jnp.float32), (1,))
    orig_shape = y.shape
    total = y.size
    sublane = _sublane_for(y.dtype)
    unit = sublane * LANE

    # Lane-dense, sublane-aligned prefix goes through the Pallas kernel; the
    # ragged tail (< one aligned tile) is scaled in plain JAX so the kernel
    # never degrades to lane-sparse masked stores or oversized single blocks.
    main = (total // unit) * unit
    if main == 0:
        # Tensor smaller than one aligned tile: not worth a kernel launch.
        return (y.astype(jnp.float32) * g_arr[0]).astype(y.dtype)

    y_flat = y.reshape(-1)
    out_main = _rezero_scale_2d(y_flat[:main].reshape(main // LANE, LANE), g_arr)
    out_flat = out_main.reshape(-1)
    if main != total:
        tail = (y_flat[main:].astype(jnp.float32) * g_arr[0]).astype(y.dtype)
        out_flat = jnp.concatenate([out_flat, tail])
    return out_flat.reshape(orig_shape)


def rezero_forward(fn, g, x, *, fuse_into_producer=False, **kwargs):
    """Faithful port of Rezero.forward: x, *rest = fn(x, **kwargs); (x*g, *rest)."""
    # TODO(synk): the wrapped `fn` is arbitrary user code (e.g. an attention
    # block) with no generic Pallas equivalent; it runs as plain JAX here and
    # only the learnable-scalar rescale goes through the Pallas kernel.
    out = fn(x, **kwargs)
    if not isinstance(out, (tuple, list)):
        out = (out,)
    y, *rest = out
    if fuse_into_producer:
        # Cheapest path when fn's output is not already materialized in HBM:
        # let XLA fuse the scale into fn's epilogue (zero extra HBM traffic).
        y_scaled = (y.astype(jnp.float32) * jnp.asarray(g, jnp.float32).reshape(())
                    ).astype(y.dtype)
    else:
        y_scaled = rezero_scale(y, g)
    return (y_scaled, *rest)


# ---------------------------------------------------------------------------
# Demo / self-test
# ---------------------------------------------------------------------------
if __name__ == "__main__":
    key = jax.random.PRNGKey(0)
    k_x, k_w, k_big, k_bf = jax.random.split(key, 4)

    # Small shapes consistent with what Rezero wraps: batch=2, seq=8, hidden=64.
    B, S, Dm = 2, 8, 64
    x = jax.random.normal(k_x, (B, S, Dm), jnp.float32)
    w = (jax.random.normal(k_w, (Dm, Dm), jnp.float32) / np.sqrt(Dm)).astype(jnp.float32)

    # Stand-in for the wrapped module: returns (primary, aux) like the blocks
    # Rezero wraps; the tuple tail must pass through unscaled.
    def fn(x, scale=1.0):
        y = jnp.tanh(x @ w) * scale
        aux = jnp.sum(y, axis=-1)
        return y, aux

    # 1) Fresh module: g initialized to zero -> primary output is all zeros,
    #    aux output is passed through untouched.
    g0 = jnp.zeros((1,), jnp.float32)
    out0, aux0 = rezero_forward(fn, g0, x, scale=1.5)
    out0 = jax.block_until_ready(out0)
    np.testing.assert_allclose(np.asarray(out0),
                               np.zeros((B, S, Dm), np.float32))

    # 2) Nonzero g: compare against the plain-JAX reference.
    g1 = jnp.float32(0.37)
    out1, aux1 = rezero_forward(fn, g1, x, scale=1.5)
    out1 = jax.block_until_ready(out1)
    y_ref, aux_ref = fn(x, scale=1.5)
    np.testing.assert_allclose(np.asarray(out1),
                               np.asarray(y_ref) * np.float32(0.37),
                               rtol=1e-6, atol=1e-6)
    np.testing.assert_allclose(np.asarray(aux1), np.asarray(aux_ref),
                               rtol=1e-6, atol=1e-6)

    # 3) Larger f32 tensor: byte-sized blocks, >= 2 grid steps (megacore path).
    xb = jax.random.normal(k_big, (16, 64, 128), jnp.float32)
    outb = jax.block_until_ready(rezero_scale(xb, g1))
    np.testing.assert_allclose(np.asarray(outb),
                               np.asarray(xb) * np.float32(0.37),
                               rtol=1e-6, atol=1e-6)

    # 4) Ragged element count: aligned prefix via the kernel + plain-JAX tail,
    #    including a partial (masked) final row block.
    xr = jax.random.normal(k_big, (5, 9, 131), jnp.float32)
    outr = jax.block_until_ready(rezero_scale(xr, g1))
    np.testing.assert_allclose(np.asarray(outr),
                               np.asarray(xr) * np.float32(0.37),
                               rtol=1e-6, atol=1e-6)

    # 5) bf16 activations: exercises the 16-row sublane-alignment path.
    xh = jax.random.normal(k_bf, (4, 32, 128), jnp.float32).astype(jnp.bfloat16)
    outh = jax.block_until_ready(rezero_scale(xh, g1))
    ref_h = (xh.astype(jnp.float32) * jnp.float32(0.37)).astype(jnp.bfloat16)
    np.testing.assert_allclose(np.asarray(outh).astype(np.float32),
                               np.asarray(ref_h).astype(np.float32),
                               rtol=1e-2, atol=1e-2)

    print("KERNEL_OK")
</pallas_src>

<mosaic_0001>
module attributes {stable_mosaic.version = 11 : i64} {
  func.func @_rezero_kernel(%arg0: i32, %arg1: memref<1xf32, #tpu.memory_space<smem>>, %arg2: memref<8x128xf32, #tpu.memory_space<vmem>>, %arg3: memref<8x128xf32, #tpu.memory_space<vmem>>) attributes {dimension_semantics = [#tpu.dimension_semantics<parallel>], iteration_bounds = array<i64: 1>, scalar_prefetch = 0 : i64, scratch_operands = 0 : i64, tpu.core_type = #tpu.core_type<tc>, window_params = [{transform_indices = @transform_0, window_bounds = array<i64: 1>}, {transform_indices = @transform_1, window_bounds = array<i64: 8, 128>}, {transform_indices = @transform_2, window_bounds = array<i64: 8, 128>}]} {
    %c0 = arith.constant 0 : index
    %c0_0 = arith.constant 0 : index
    %0 = vector.load %arg2[%c0, %c0_0] : memref<8x128xf32, #tpu.memory_space<vmem>>, vector<8x128xf32>
    %c0_1 = arith.constant 0 : index
    %1 = memref.load %arg1[%c0_1] : memref<1xf32, #tpu.memory_space<smem>>
    %2 = vector.broadcast %1 : f32 to vector<8x128xf32>
    %3 = arith.mulf %0, %2 : vector<8x128xf32>
    %c0_2 = arith.constant 0 : index
    %c0_3 = arith.constant 0 : index
    %4 = vector.load %arg3[%c0_2, %c0_3] : memref<8x128xf32, #tpu.memory_space<vmem>>, vector<8x128xf32>
    tpu.vector_store %arg3[%c0_2, %c0_3], %3 {strides = array<i32>} : memref<8x128xf32, #tpu.memory_space<vmem>>, vector<8x128xf32>,
    return
  }
  func.func @transform_0(%arg0: i32) -> i32 {
    %c0_i32 = arith.constant 0 : i32
    %c0_i32_0 = arith.constant 0 : i32
    return %c0_i32 : i32
  }
  func.func @transform_1(%arg0: i32) -> (i32, i32) {
    %c0_i32 = arith.constant 0 : i32
    %c0_i32_0 = arith.constant 0 : i32
    return %arg0, %c0_i32 : i32, i32
  }
  func.func @transform_2(%arg0: i32) -> (i32, i32) {
    %c0_i32 = arith.constant 0 : i32
    %c0_i32_0 = arith.constant 0 : i32
    return %arg0, %c0_i32 : i32, i32
  }
}

</mosaic_0001>

<bundles_post_ra>
// kernel: tpu_custom_call.1
= control target key start
LH: loop header
LB: loop body
LE: loop exit
PB: predicated region body
PF: predicated region fallthrough
CT: control target
= control target key end

     0   :  { %8 = vsyncpa [#allocation4], 0  ;;  %s139_s0 = inlined_call_operand.<no memory space> [shape: f32[1], index: 0, kind: input, shape index: {}]   ;;  %s140_s1 = inlined_call_operand.hbm [shape: f32[8,128], index: 1, kind: input, shape index: {}]   ;;  %s141_s2 = inlined_call_operand.hbm [shape: f32[8,128], index: 2, kind: output, shape index: {}]  }
   0x1   :  { %9 = vsyncpa [#allocation5], 0  ;;  %s95_s9 = smov [#allocation3]   ;;  %s47_s13 = scalar_lea.hbm %s140_s1, 128 }
   0x2   :  { %s18_s10 = sshll.u32 %s95_s9, 4  ;;  %p48_p0 = scmp.ne.s32.totalorder %s140_s1, %s47_s13  ;;  %s19_s10 = int_to_ptr.vmem [resolvable:$true] %s18_s10 }
   0x3   :  { %p51_p1 = scmp.lt.u32.totalorder %s47_s13, %s140_s1 }
   0x5   :  { %p53_p2 = pnand %p51_p1, %p48_p0 }
   0x7   :  { %56 = shalt.err (!%p53_p2)
}
   0x8   :  { %s57_s18 = scalar_lea.vmem %s19_s10, 128  ;;  %p62_p4 = scmp.lt.s32.totalorder %s19_s10, %s19_s10 }
   0x9   :  { %p58_p3 = scmp.ne.s32.totalorder %s19_s10, %s57_s18  ;;  %p63_p5 = scmp.lt.s32.totalorder %s57_s18, %s57_s18 }
   0xb   :  { %p64_p6 = por %p63_p5, %p62_p4 }
   0xd   :  { %p65_p7 = pnand %p64_p6, %p58_p3 }
   0xf   :  { %68 = shalt.err (!%p65_p7)
}
  0x10   :  { %21 = dma.hbm_to_vmem [thread:$0]  %s140_s1, 128, %s19_s10, [#allocation4]  }
  0x11   :  { %91 = dma.done.wait [#allocation4], 128  }
  0x12   :  { %92 = vsyncadd [#allocation4], 4294967168  ;;  %v27_v0 = vstv %s139_s0  ;;  %s96_s23 = smov [#allocation6]   ;;  %v25_v1 = vld [vmem:[#allocation3] sm:$0xff] }
  0x13   :  { %s36_s24 = sshll.u32 %s96_s23, 4  ;;  %v28_v2 = vmul.f32 %v27_v0, %v25_v1  ;;  %s37_s24 = int_to_ptr.vmem [resolvable:$true] %s36_s24 }
  0x14   :  { %s69_s25 = scalar_lea.vmem %s37_s24, 128  ;;  %p74_p9 = scmp.lt.s32.totalorder %s37_s24, %s37_s24 }
  0x15   :  { %29 = vst [vmem:[#allocation6] sm:$0xff] %v28_v2  ;;  %p70_p8 = scmp.ne.s32.totalorder %s37_s24, %s69_s25  ;;  %p75_p10 = scmp.lt.s32.totalorder %s69_s25, %s69_s25 }
  0x17   :  { %p76_p11 = por %p75_p10, %p74_p9 }
  0x19   :  { %p77_p12 = pnand %p76_p11, %p70_p8 }
  0x1b   :  { %80 = shalt.err (!%p77_p12)
}
  0x1c   :  { %s81_s27 = scalar_lea.hbm %s141_s2, 128 }
  0x1d   :  { %p82_p13 = scmp.ne.s32.totalorder %s141_s2, %s81_s27  ;;  %p85_p0 = scmp.lt.u32.totalorder %s81_s27, %s141_s2 }
  0x1f   :  { %p87_p1 = pnand %p85_p0, %p82_p13 }
  0x21   :  { %90 = shalt.err (!%p87_p1)
}
  0x22   :  { %39 = dma.vmem_to_hbm [thread:$0]  %s37_s24, 128, %s141_s2, [#allocation5]  }
  0x23   :  { %93 = dma.done.wait [#allocation5], 128  }
  0x24   :  { %94 = vsyncadd [#allocation5], 4294967168 }
  0x25   :  { %43 = vsyncpa [#allocation4], 1 }
  0x26   :  { %44 = vsyncpa [#allocation5], 1 }

</bundles_post_ra>
